<compile_context>
chip_gen: v7x
topology: tpu7x:2x2x1
jax: 0.10.0
libtpu: 0.0.40
codegen_flags: <defaults>
</compile_context>

<pallas_src>
import jax
import jax.numpy as jnp
from jax.experimental import pallas as pl
from jax.experimental.pallas import tpu as pltpu


# ------------------------------- Pallas kernel -------------------------------

def _convt_kernel(p_ref, w_ref, b_ref, o_ref):
    # Single fused MXU matmul per grid step, bias folded into the epilogue.
    #   p_ref: (Cdim, tile)   w_ref: (R, Cdim)   b_ref: (R, 1)   o_ref: (R, tile)
    o_ref[...] = (
        jnp.dot(w_ref[...], p_ref[...], preferred_element_type=jnp.float32)
        + b_ref[...]
    ).astype(o_ref.dtype)


# --------------------------- sub-pixel decomposition --------------------------

def _axis_plan(n_in, k, s, p, n_out):
    """Per-axis plan: phase-output extent, unified window size, window offsets, padding."""
    q = -(-n_out // s)                       # ceil(n_out / s): max per-phase extent
    offs = []
    for ph in range(s):
        r, d = (ph + p) % s, (ph + p) // s
        m = 0
        while r + s * m < k:                 # taps k_idx = r + s*m used by this phase
            offs.append(d - m)               # input offset relative to the phase base q
            m += 1
    off_min, off_max = min(offs), max(offs)
    win = off_max - off_min + 1              # unified window width (shared by all phases)
    pad_lo = max(0, -off_min)
    pad_hi = max(0, (q - 1 + off_max) - (n_in - 1))
    return q, win, off_min, pad_lo, pad_hi


def _tap_k(ph, j, off_min, k, s, p):
    """Kernel index used by phase `ph` at unified-window position `j` (or None)."""
    r, d = (ph + p) % s, (ph + p) // s
    m = d - (off_min + j)
    kk = r + s * m
    return kk if (m >= 0 and 0 <= kk < k) else None


# ------------------------------- tile selection -------------------------------

_VMEM_BLOCK_BUDGET = 24 * 1024 * 1024   # conservative: safe on v7x (64 MiB phys VMEM)


def _pick_tile(L, n_batch, cdim, rows, in_itemsize, out_itemsize):
    """Largest lane-dense tile (multiple of 128) dividing L whose double-buffered
    in+out blocks fit the VMEM budget."""
    def fits(t):
        return 2 * t * (cdim * in_itemsize + rows * out_itemsize) <= _VMEM_BLOCK_BUDGET

    tile = None
    for t in (2048, 1024, 512, 256, 128):    # prefer the LARGEST tile
        if L % t == 0 and fits(t):
            tile = t
            break
    if tile is None:
        tile = L   # full-extent block is always legal (tiny L fallback)
    # Keep >= 2 grid points on a "parallel" axis so v7x's 2 TensorCores are fed.
    if n_batch * (L // tile) < 2 and tile % 256 == 0:
        tile //= 2
    return tile


# --------------------------------- wrapper ------------------------------------

def convt2d_out_size(x_nchw, weight, bias, *, stride, padding, output_size,
                     compute_dtype=jnp.float32):
    """Equivalent of nn.ConvTranspose2d(...)(x, output_size=output_size).

    weight layout: PyTorch ConvTranspose2d (Cin, Cout, KH, KW); scalar stride/padding.
    """
    N, Cin, H, W = x_nchw.shape
    Cin_w, Cout, KH, KW = weight.shape
    assert Cin_w == Cin
    S, P = int(stride), int(padding)
    OH, OW = output_size

    # output_padding exactly as PyTorch derives it from output_size.
    opad_h = OH - ((H - 1) * S - 2 * P + KH)
    opad_w = OW - ((W - 1) * S - 2 * P + KW)
    assert 0 <= opad_h < S and 0 <= opad_w < S, "invalid output_size"

    # ---- per-axis sub-pixel plan ----
    Qh, Wh, off_min_h, pad_t, pad_b = _axis_plan(H, KH, S, P, OH)
    Qw, Ww, off_min_w, pad_l, pad_r = _axis_plan(W, KW, S, P, OW)
    T = Wh * Ww                  # unified-window taps (e.g. 3*3 instead of 4*4 dilated)
    Cdim = T * Cin               # matmul contraction dim
    R = S * S * Cout             # phase-expanded output channels
    Lq = Qh * Qw                 # per-phase spatial extent (lane axis)

    # ---- XLA glue: pad the UN-DILATED input + small unified im2col ----
    xp = jnp.pad(x_nchw, ((0, 0), (0, 0), (pad_t, pad_b), (pad_l, pad_r)))
    patches = jnp.concatenate(
        [
            xp[:, :,
               off_min_h + jh + pad_t: off_min_h + jh + pad_t + Qh,
               off_min_w + jw + pad_l: off_min_w + jw + pad_l + Qw,
               ].reshape(N, Cin, Lq)
            for jh in range(Wh)
            for jw in range(Ww)
        ],
        axis=1,
    ).astype(compute_dtype)                                  # (N, T*Cin, Qh*Qw)

    # ---- phase-expanded weight matrix (R, Cdim); flip/phase selection folded in ----
    zeros_blk = jnp.zeros((Cout, Cin), weight.dtype)
    phase_rows = []
    for ph in range(S):
        for pw in range(S):
            cols = []
            for jh in range(Wh):
                kh = _tap_k(ph, jh, off_min_h, KH, S, P)
                for jw in range(Ww):
                    kw = _tap_k(pw, jw, off_min_w, KW, S, P)
                    if kh is None or kw is None:
                        cols.append(zeros_blk)
                    else:
                        cols.append(weight[:, :, kh, kw].T)   # (Cout, Cin)
            phase_rows.append(jnp.concatenate(cols, axis=1))  # (Cout, Cdim)
    wmat = jnp.concatenate(phase_rows, axis=0).astype(compute_dtype)   # (R, Cdim)
    b2 = jnp.tile(bias, S * S).reshape(R, 1).astype(jnp.float32)       # (R, 1)

    in_itemsize = jnp.dtype(compute_dtype).itemsize
    tile = _pick_tile(Lq, N, Cdim, R, in_itemsize, 4)
    assert Lq % tile == 0
    grid = (N, Lq // tile)

    out = pl.pallas_call(
        _convt_kernel,
        out_shape=jax.ShapeDtypeStruct((N, R, Lq), jnp.float32),
        grid_spec=pltpu.PrefetchScalarGridSpec(
            num_scalar_prefetch=0,
            grid=grid,
            in_specs=[
                # per-step patch block: full contraction dim, one lane-dense spatial tile
                pl.BlockSpec((None, Cdim, tile), lambda n, j: (n, 0, j)),
                # weights + bias stay resident (same block every step)
                pl.BlockSpec((R, Cdim), lambda n, j: (0, 0)),
                pl.BlockSpec((R, 1), lambda n, j: (0, 0)),
            ],
            out_specs=pl.BlockSpec((None, R, tile), lambda n, j: (n, 0, j)),
        ),
        compiler_params=pltpu.CompilerParams(
            dimension_semantics=("parallel", "parallel"),
            vmem_limit_bytes=32 * 1024 * 1024,
        ),
    )(patches, wmat, b2)

    # ---- depth-to-space: interleave the S*S phase planes, then crop to output_size ----
    out = out.reshape(N, S, S, Cout, Qh, Qw)
    out = jnp.transpose(out, (0, 3, 4, 1, 5, 2))      # (N, Cout, Qh, S, Qw, S)
    out = out.reshape(N, Cout, S * Qh, S * Qw)
    return out[:, :, :OH, :OW].astype(x_nchw.dtype)


# ------------------------------ pure-JAX reference -----------------------------

def _reference(x_nchw, weight, bias, *, stride, padding, output_size):
    """Pure-JAX reference for ConvTranspose2d with output_size (NCHW)."""
    N, Cin, H, W = x_nchw.shape
    _, Cout, KH, KW = weight.shape
    OH, OW = output_size
    opad_h = OH - ((H - 1) * stride - 2 * padding + KH)
    opad_w = OW - ((W - 1) * stride - 2 * padding + KW)
    w_oihw = jnp.transpose(jnp.flip(weight, (2, 3)), (1, 0, 2, 3))  # (Cout,Cin,KH,KW)
    out = jax.lax.conv_general_dilated(
        x_nchw,
        w_oihw,
        window_strides=(1, 1),
        padding=(
            (KH - 1 - padding, KH - 1 - padding + opad_h),
            (KW - 1 - padding, KW - 1 - padding + opad_w),
        ),
        lhs_dilation=(stride, stride),
        rhs_dilation=(1, 1),
        dimension_numbers=("NCHW", "OIHW", "NCHW"),
    )
    return out + bias[None, :, None, None]


if __name__ == "__main__":
    # Module configuration (synthetic, deterministic):
    #   conv = nn.ConvTranspose2d(in_channels=4, out_channels=8,
    #                             kernel_size=4, stride=2, padding=1)
    #   output_size = (32, 32)
    N, C_IN, H, W = 2, 4, 16, 16
    C_OUT, K, S, P = 8, 4, 2, 1
    OUTPUT_SIZE = (32, 32)

    key = jax.random.PRNGKey(0)
    kx, kw, kb = jax.random.split(key, 3)
    x = jax.random.normal(kx, (N, C_IN, H, W), dtype=jnp.float32)
    # PyTorch ConvTranspose2d weight layout: (Cin, Cout, KH, KW)
    weight = 0.1 * jax.random.normal(kw, (C_IN, C_OUT, K, K), dtype=jnp.float32)
    bias = 0.1 * jax.random.normal(kb, (C_OUT,), dtype=jnp.float32)

    out = convt2d_out_size(
        x, weight, bias, stride=S, padding=P, output_size=OUTPUT_SIZE
    )
    out = jax.block_until_ready(out)

    ref = _reference(x, weight, bias, stride=S, padding=P, output_size=OUTPUT_SIZE)
    assert out.shape == (N, C_OUT, OUTPUT_SIZE[0], OUTPUT_SIZE[1]), out.shape
    max_err = float(jnp.max(jnp.abs(out - ref)))
    assert jnp.allclose(out, ref, atol=2e-4, rtol=2e-4), max_err
    print("KERNEL_OK")
</pallas_src>

<mosaic_0001>
module attributes {stable_mosaic.version = 11 : i64} {
  func.func @_convt_kernel(%arg0: i32, %arg1: i32, %arg2: memref<1x36x256xf32, #tpu.memory_space<vmem>>, %arg3: memref<32x36xf32, #tpu.memory_space<vmem>>, %arg4: memref<32x1xf32, #tpu.memory_space<vmem>>, %arg5: memref<1x32x256xf32, #tpu.memory_space<vmem>>) attributes {dimension_semantics = [#tpu.dimension_semantics<parallel>, #tpu.dimension_semantics<parallel>], iteration_bounds = array<i64: 2, 1>, scalar_prefetch = 0 : i64, scratch_operands = 0 : i64, tpu.core_type = #tpu.core_type<tc>, window_params = [{transform_indices = @transform_0, window_bounds = array<i64: 1, 36, 256>}, {pipeline_mode = #tpu.pipeline_mode<synchronous>, transform_indices = @transform_1, window_bounds = array<i64: 32, 36>}, {pipeline_mode = #tpu.pipeline_mode<synchronous>, transform_indices = @transform_2, window_bounds = array<i64: 32, 1>}, {transform_indices = @transform_3, window_bounds = array<i64: 1, 32, 256>}]} {
    %c0 = arith.constant 0 : index
    %c0_0 = arith.constant 0 : index
    %0 = vector.load %arg3[%c0, %c0_0] : memref<32x36xf32, #tpu.memory_space<vmem>>, vector<32x36xf32>
    %c0_1 = arith.constant 0 : index
    %c0_2 = arith.constant 0 : index
    %c0_3 = arith.constant 0 : index
    %1 = vector.load %arg2[%c0_1, %c0_2, %c0_3] : memref<1x36x256xf32, #tpu.memory_space<vmem>>, vector<1x36x256xf32>
    %2 = vector.shape_cast %1 : vector<1x36x256xf32> to vector<36x256xf32>
    %cst = arith.constant dense<0.000000e+00> : vector<32x256xf32>
    %3 = tpu.matmul %0, %2, %cst {dimension_numbers = #tpu.dot_dimension_numbers<[1], [0], [0], [1], [0, 0, 1, 1], [], []>} : vector<32x36xf32>, vector<36x256xf32>, vector<32x256xf32> -> vector<32x256xf32>
    %c0_4 = arith.constant 0 : index
    %c0_5 = arith.constant 0 : index
    %4 = vector.load %arg4[%c0_4, %c0_5] : memref<32x1xf32, #tpu.memory_space<vmem>>, vector<32x1xf32>
    %5 = vector.broadcast %4 : vector<32x1xf32> to vector<32x256xf32>
    %6 = arith.addf %3, %5 : vector<32x256xf32>
    %c0_6 = arith.constant 0 : index
    %c0_7 = arith.constant 0 : index
    %c0_8 = arith.constant 0 : index
    %7 = vector.load %arg5[%c0_6, %c0_7, %c0_8] : memref<1x32x256xf32, #tpu.memory_space<vmem>>, vector<1x32x256xf32>
    %8 = vector.shape_cast %7 : vector<1x32x256xf32> to vector<32x256xf32>
    %9 = vector.shape_cast %6 : vector<32x256xf32> to vector<1x32x256xf32>
    tpu.vector_store %arg5[%c0_6, %c0_7, %c0_8], %9 {strides = array<i32>} : memref<1x32x256xf32, #tpu.memory_space<vmem>>, vector<1x32x256xf32>,
    return
  }
  func.func @transform_0(%arg0: i32, %arg1: i32) -> (i32, i32, i32) {
    %c0_i32 = arith.constant 0 : i32
    %c0_i32_0 = arith.constant 0 : i32
    return %arg0, %c0_i32, %arg1 : i32, i32, i32
  }
  func.func @transform_1(%arg0: i32, %arg1: i32) -> (i32, i32) {
    %c0_i32 = arith.constant 0 : i32
    %c0_i32_0 = arith.constant 0 : i32
    %c0_i32_1 = arith.constant 0 : i32
    return %c0_i32, %c0_i32_0 : i32, i32
  }
  func.func @transform_2(%arg0: i32, %arg1: i32) -> (i32, i32) {
    %c0_i32 = arith.constant 0 : i32
    %c0_i32_0 = arith.constant 0 : i32
    %c0_i32_1 = arith.constant 0 : i32
    return %c0_i32, %c0_i32_0 : i32, i32
  }
  func.func @transform_3(%arg0: i32, %arg1: i32) -> (i32, i32, i32) {
    %c0_i32 = arith.constant 0 : i32
    %c0_i32_0 = arith.constant 0 : i32
    return %arg0, %c0_i32, %arg1 : i32, i32, i32
  }
}

</mosaic_0001>

<bundles_post_ra>
// kernel: tpu_custom_call.1
= control target key start
LH: loop header
LB: loop body
LE: loop exit
PB: predicated region body
PF: predicated region fallthrough
CT: control target
= control target key end

     0   :  { %8 = vsyncpa [#allocation3], 0  ;;  %s793_s0 = inlined_call_operand.vmem [shape: f32[2,36,256], index: 0, kind: input, shape index: {}]   ;;  %s794_s1 = inlined_call_operand.vmem [shape: f32[32,36], index: 1, kind: input, shape index: {}]   ;;  %s795_s2 = inlined_call_operand.vmem [shape: f32[32,1], index: 2, kind: input, shape index: {}]   ;;  %s796_s3 = inlined_call_operand.hbm [shape: f32[2,32,256], index: 3, kind: output, shape index: {}]  }
   0x1   :  { %10 = vsyncpa [#allocation3 + $0x1], 0  ;;  %s650_s12 = smov 0   ;;  %s652_s13 = smov 0  }
   0x2   :  { %s654_s14 = smov 0   ;;  %s656_s15 = smov 0  }
   0x3   :  { %s658_s16 = smov 0   ;;  %s660_s17 = smov 0  }
   0x4 LB: > { %s450_s18 = sadd.s32 4294967295, %s623_s17   ;;  %s451_s19 = sadd.s32 4294967294, %s623_s17   ;;  %s623_s17 = sphi %s660_s17, %s16_s17   ;;  %s619_s16 = sphi %s658_s16, %s803_s16   ;;  %s615_s15 = sphi %s656_s15, %s802_s15   ;;  %s611_s14 = sphi %s654_s14, %s801_s14   ;;  %s607_s13 = sphi %s652_s13, %s800_s13   ;;  %s603_s12 = sphi %s650_s12, %s799_s12  }
   0x5   : > { %s28_s20 = sadd.s32 1, %s619_s16  ;;  %s107_s21 = sadd.s32 1, %s611_s14 }
   0x6   : > { %p30_p0 = scmp.ge.s32.totalorder %s28_s20, 2  ;;  %p117_p1 = scmp.ne.s32.totalorder %s611_s14, %s607_s13 }
   0x7   : > { %p118_p2 = scmp.eq.s32.totalorder %s450_s18, 1  ;;  %p123_p3 = scmp.ne.s32.totalorder %s607_s13, %s603_s12 }
   0x8   : > { %s805_s20 = smov (%p30_p0, %s28_s20), 0  ;;  %p124_p5 = scmp.eq.s32.totalorder %s451_s19, 1 }
   0x9   : > { %p690_p4 = por %p118_p2, %p117_p1  ;;  %s102_s23 = ssub.s32 %s619_s16, %s805_s20 }
   0xa   : > { %p454_p6 = scmp.ge.s32.totalorder %s623_s17, 1  ;;  %p105_p7 = scmp.eq.s32.totalorder %s102_s23, 0 }
   0xb   : > { %p697_p8 = por %p124_p5, %p123_p3  ;;  %p161_p9 = scmp.lt.s32.totalorder %s623_s17, 3 }
   0xc   : > { %s703_s25 = scalar_select %p105_p7, %s611_s14, %s107_s21  }
   0xd   : > { %p162_p10 = pnand %p454_p6, %p161_p9 }
   0xe   : > { %p190_p11 = scmp.lt.s32.totalorder (!%p162_p10), %s615_s15, 1  ;;  %v625_v0 = vmov (!%p162_p10), 0.0   ;;  %v216_v1 = vld [vmem:[%s795_s2 + $0x10] sm:$0xff] (!%p162_p10)  ;;  %v626_v2 = vmov (!%p162_p10), 0   ;;  %v214_v3 = vld [vmem:[%s795_s2] sm:$0xff] (!%p162_p10)  ;;  %v217_v4 = vld [vmem:[%s795_s2 + $0x18] sm:$0xff] (!%p162_p10) }
   0xf   : > { %165 = sbr.rel (%p162_p10) target bundleno = 274 (0x112), region = 32  ;;  %322 = vmatprep.mubr.f32.mxu0 (!%p162_p10), %v625_v0  ;;  %334 = vmatprep.mubr.f32.mxu1 (!%p162_p10), %v625_v0  ;;  %v215_v5 = vld [vmem:[%s795_s2 + $0x8] sm:$0xff] (!%p162_p10)  ;;  %vm251_vm0 = vcmask (!%p162_p10), 1043456   ;;  %v200_v20 = vld [vmem:[%s794_s1] sm:$0xff] (!%p162_p10)  ;;  %vm238_vm1 = vcmask (!%p162_p10), 293888   ;;  %v202_v21 = vld [vmem:[%s794_s1 + $0x10] sm:$0xff] (!%p162_p10) }
  0x10   : > { %544 = vset.pattern.permute.xlu1 (!%p162_p10), %v626_v2  ;;  %543 = vset.pattern.permute.xlu0 (!%p162_p10), %v626_v2  ;;  %v201_v22 = vld [vmem:[%s794_s1 + $0x8] sm:$0xff] (!%p162_p10)  ;;  %v203_v23 = vld [vmem:[%s794_s1 + $0x18] sm:$0xff] (!%p162_p10)  ;;  %s186_s30 = sand.u32 (!%p162_p10), 1, %s607_s13   ;;  %s468_s5 = sshll.u32 (!%p162_p10), %s615_s15, 10 }
  0x11   : > { %230 = vperm.xlu1 (!%p162_p10), %544, %v216_v1   ;;  %220 = vperm.xlu0 (!%p162_p10), %543, %v214_v3   ;;  %s747_s10 = scalar_lea.sflag (!%p162_p10), [#allocation3], %s186_s30  ;;  %s627_s18 = smov (!%p162_p10), [#allocation2]  }
  0x12   : > { %s549_s19 = sshll.u32 (!%p162_p10), %s627_s18, 4  ;;  %s550_s19 = int_to_ptr.vmem [resolvable:$false] %s549_s19 }
  0x13   : > { %s551_s21 = scalar_lea.vmem (!%p162_p10), %s550_s19, 2048 }
  0x15   : > { %235 = vperm.xlu1 (!%p162_p10), %544, %v217_v4   ;;  %225 = vperm.xlu0 (!%p162_p10), %543, %v215_v5  }
  0x16   : > { %s191_s28 = scalar_select %p190_p11, %s615_s15, 1 }
  0x17   : > { %s741_s15 = scalar_lea.hbm %s796_s3, %s468_s5 }
  0x18   : > { %s483_s4 = smul.u32 80, %s191_s28 }
  0x1a   : > { %s197_s11 = scalar_lea.vmem %s793_s0, %s483_s4  ;;  %s455_s4 = sshll.u32 %s186_s30, 6 }
  0x1b   : > { %v205_v6 = vld [vmem:[%s197_s11 + $0x8] sm:$0xff]  ;;  %v207_v7 = vld [vmem:[%s197_s11 + $0x18] sm:$0xff]  ;;  %v204_v8 = vld [vmem:[%s197_s11] sm:$0xff]  ;;  %s188_s6 = scalar_lea.vmem [#allocation2], %s455_s4 }
  0x1c   : > { %v469_v9 = vpack.c.bf16 %v207_v7, %v205_v6  ;;  %v206_v10 = vld [vmem:[%s197_s11 + $0x10] sm:$0xff]  ;;  %v209_v11 = vld [vmem:[%s197_s11 + $0x28] sm:$0xff]  ;;  %v211_v12 = vld [vmem:[%s197_s11 + $0x38] sm:$0xff]  ;;  %s371_s7 = sshll.u32 %s188_s6, 4  ;;  %s743_s7 = int_to_ptr.vmem [resolvable:$true] %s371_s7 }
  0x1d   : > { %v471_v13 = vpack.c.bf16 %v206_v10, %v204_v8  ;;  %v473_v14 = vpack.c.bf16 %v211_v12, %v209_v11  ;;  %v208_v15 = vld [vmem:[%s197_s11 + $0x20] sm:$0xff]  ;;  %v210_v16 = vld [vmem:[%s197_s11 + $0x30] sm:$0xff]  ;;  %v213_v18 = vld [vmem:[%s197_s11 + $0x48] sm:$0xf]  ;;  %p552_p1 = scmp.lt.s32.totalorder %s743_s7, %s550_s19 }
  0x1e   : > { %470 = vmatprep.subr.bf16.mxu0 %v469_v9  ;;  %477 = vmatprep.subr.bf16.mxu1 %v469_v9  ;;  %v475_v17 = vpack.c.bf16 %v210_v16, %v208_v15  ;;  %v212_v19 = vld [vmem:[%s197_s11 + $0x40] sm:$0xf]  ;;  %s545_s11 = scalar_lea.vmem %s743_s7, 1024 }
  0x1f   : > { %472 = vmatpush1.bf16.msra.mxu0 %v471_v13  ;;  %480 = vmatpush1.bf16.msra.mxu1 %v471_v13  ;;  %p546_p12 = scmp.ne.s32.totalorder %s743_s7, %s545_s11  ;;  %p553_p2 = scmp.lt.s32.totalorder %s551_s21, %s545_s11 }
  0x20   : > { %474 = vmatprep.subr.bf16.mxu0 %v473_v14  ;;  %478 = vmatprep.subr.bf16.mxu1 %v473_v14 }
  0x21   : > { %p547_p13 = pnand %p546_p12, %p690_p4  ;;  %p554_p3 = por %p553_p2, %p552_p1 }
  0x23   : > { %476 = vmatpush1.bf16.msra.mxu0 %v475_v17  ;;  %481 = vmatpush1.bf16.msra.mxu1 %v475_v17  ;;  %p548_p0 = pneg %p547_p13 }
  0x24   : > { %457 = vmatprep.subr.msk.mxu0 %vm251_vm0, %v213_v18  ;;  %479 = vmatprep.subr.msk.mxu1 %vm251_vm0, %v213_v18 }
  0x25   : > { %p555_p5 = pnand %p554_p3, %p548_p0 }
  0x27   : > { %458 = vmatpush1.msk.msra.mxu0 %vm251_vm0, %v212_v19  ;;  %482 = vmatpush1.msk.msra.mxu1 %vm251_vm0, %v212_v19 }
  0x28   : > { %459 = vmatmul.mubr.msk.f32.vlgmr.msra.gmra.mrb[0].mxu0 %vm238_vm1, %v200_v20  ;;  %461 = vmatmul.mubr.msk.f32.vlgmr.msra.gmra.mrb[0].mxu1 %vm238_vm1, %v202_v21 }
  0x29   : > { %328 = vmatprep.mubr.f32.mxu0 %v625_v0  ;;  %340 = vmatprep.mubr.f32.mxu1 %v625_v0 }
  0x2c   : > { %460 = vmatmul.mubr.msk.f32.gmra.mrb[2].mxu0 %vm238_vm1, %v201_v22  ;;  %462 = vmatmul.mubr.msk.f32.gmra.mrb[2].mxu1 %vm238_vm1, %v203_v23 }
  0x90   : > { %v231_v24 = vpop.permute.xlu1 %230  ;;  %v221_v25 = vpop.permute.xlu0 %220 }
  0x94   : > { %v236_v34 = vpop.permute.xlu1 %235  ;;  %v226_v35 = vpop.permute.xlu0 %225 }
  0xfb   : > { %v324_v26 = vpop.f32.mrb[0].mxu0  ;;  %v336_v27 = vpop.f32.mrb[0].mxu1 }
  0xfc   : > { %v325_v28 = vadd.f32 %v324_v26, %v221_v25  ;;  %v337_v29 = vadd.f32 %v336_v27, %v231_v24  ;;  %v326_v30 = vpop.f32.mrb[1].mxu0  ;;  %v338_v31 = vpop.f32.mrb[1].mxu1 }
  0xfd   : > { %v327_v32 = vadd.f32 %v326_v30, %v221_v25  ;;  %v339_v33 = vadd.f32 %v338_v31, %v231_v24 }
  0xfe   : > { %347 = vst [vmem:[%s188_s6] sm:$0xff] %v325_v28  ;;  %351 = vst [vmem:[%s188_s6 + $0x20] sm:$0xff] %v337_v29 }
  0xff   : > { %348 = vst [vmem:[%s188_s6 + $0x8] sm:$0xff] %v327_v32  ;;  %352 = vst [vmem:[%s188_s6 + $0x28] sm:$0xff] %v339_v33  ;;  %v330_v36 = vpop.f32.mrb[2].mxu0  ;;  %v342_v37 = vpop.f32.mrb[2].mxu1 }
 0x100   : > { %v331_v38 = vadd.f32 %v330_v36, %v226_v35  ;;  %v343_v39 = vadd.f32 %v342_v37, %v236_v34  ;;  %v332_v40 = vpop.f32.mrb[3].mxu0  ;;  %v344_v41 = vpop.f32.mrb[3].mxu1 }
 0x101   : > { %v333_v42 = vadd.f32 %v332_v40, %v226_v35  ;;  %v345_v43 = vadd.f32 %v344_v41, %v236_v34 }
 0x102   : > { %349 = vst [vmem:[%s188_s6 + $0x10] sm:$0xff] %v331_v38  ;;  %353 = vst [vmem:[%s188_s6 + $0x30] sm:$0xff] %v343_v39 }
 0x103   : > { %350 = vst [vmem:[%s188_s6 + $0x18] sm:$0xff] %v333_v42  ;;  %354 = vst [vmem:[%s188_s6 + $0x38] sm:$0xff] %v345_v43 }
 0x104   : > { %558 = shalt.err (!%p555_p5)
}
 0x105   : > { %s559_s23 = scalar_lea.hbm %s741_s15, 1024  ;;  %s563_s28 = scalar_lea.hbm %s796_s3, 2048 }
 0x106   : > { %p560_p6 = scmp.ne.s32.totalorder %s741_s15, %s559_s23  ;;  %p564_p10 = scmp.lt.u32.totalorder %s741_s15, %s796_s3 }
 0x107   : > { %p565_p11 = scmp.lt.u32.totalorder %s563_s28, %s559_s23  ;;  %p567_p13 = scmp.lt.u32.totalorder %s559_s23, %s741_s15 }
 0x108   : > { %p561_p7 = pnand %p560_p6, %p690_p4 }
 0x109   : > { %p566_p12 = por %p565_p11, %p564_p10 }
 0x10a   : > { %p562_p9 = pneg %p561_p7 }
 0x10b   : > { %p568_p0 = por %p567_p13, %p566_p12 }
 0x10d   : > { %p569_p1 = pnand %p568_p0, %p562_p9 }
 0x10f   : > { %572 = shalt.err (!%p569_p1)
}
 0x110   : > { %s628_s4 = smov 256   ;;  %s629_s5 = smov 16  }
 0x111   : > { %484 = dma.vmem_to_hbm [thread:$0]  (%p690_p4), %s743_s7, 1024, %s741_s15, %s747_s10, %s628_s4, %s628_s4, %s629_s5  }
 0x112 PF: > { %p490_p2 = scmp.ge.s32.totalorder %s623_s17, 2  ;;  %s386_s6 = sand.u32 1, %s603_s12  }
 0x113   : > { %s387_s8 = scalar_lea.sflag [#allocation3], %s386_s6 }
 0x114   : > { %p487_p3 = pnand %p490_p2, %p697_p8 }
 0x116   : > { %598 = dma.done.wait (!%p487_p3), %s387_s8, 1024  }
 0x117   : > { %600 = vsyncadd (!%p487_p3), %s387_s8, 4294966272  ;;  %s16_s17 = sadd.s32 1, %s623_s17   ;;  %s799_s12 = smov %s607_s13 }
 0x118   : > { %p13_p5 = scmp.ge.s32.totalorder %s16_s17, 4   ;;  %s800_s13 = smov %s611_s14 }
 0x119   : > { %s801_s14 = smov %s703_s25  ;;  %s802_s15 = smov %s619_s16 }
 0x11a   : > { %s803_s16 = smov %s805_s20  ;;  %15 = sbr.rel (!%p13_p5) target bundleno = 4 (0x4), region = 67 }
 0x121   :  { %392 = vsyncpa [#allocation3], 1 }
 0x122   :  { %394 = vsyncpa [#allocation3 + $0x1], 1 }

</bundles_post_ra>
